<compile_context>
chip_gen: v7x
topology: tpu7x:2x2x1
jax: 0.10.0
libtpu: 0.0.40
codegen_flags: <defaults>
</compile_context>

<pallas_src>
import jax
import jax.numpy as jnp
from jax.experimental import pallas as pl
from jax.experimental.pallas import tpu as pltpu


def _se_gate_kernel(scale_ref, x_ref, o_ref):
    # scale_ref: (r_blk, 1), x_ref/o_ref: (r_blk, S).  Math in f32 (v5e's
    # VPU/EUP have no bf16); cast on store.  Sigmoid goes to the EUP slot.
    gate = jax.nn.sigmoid(scale_ref[...].astype(jnp.float32))
    o_ref[...] = (gate * x_ref[...].astype(jnp.float32)).astype(o_ref.dtype)


def _pick_row_block(rows, spatial, x_dtype, s_dtype):
    """Largest multiple-of-8 divisor of `rows` under a conservative VMEM budget,
    preferring >=4 grid steps for DMA/writeback overlap."""
    lanes = ((spatial + 127) // 128) * 128          # lane padding of the data tile
    x_bytes = lanes * jnp.dtype(x_dtype).itemsize
    s_bytes = 128 * jnp.dtype(s_dtype).itemsize     # gate pads to 128 lanes too
    # (in + out + gate) x double-buffered, per row of the block
    per_row = 2 * (2 * x_bytes + s_bytes)
    budget = 8 * 1024 * 1024                        # fits every gen incl. v7x 64 MiB

    if rows % 8 != 0:
        # Sublane block dim must be a multiple of 8 or the full extent.
        # TODO(synk): pad rows to a multiple of 8 if an odd row count ever
        # overflows the VMEM budget as a single full-extent block.
        return rows

    cap_budget = max(8, budget // per_row)
    # Aim for >= 4 steps (2 per TensorCore on v7x, pipelined DMA overlap) but
    # never exceed the budget and never tile finer than necessary (v5e/v6e:
    # each extra step costs ~0.35 us of fixed overhead).
    cap = min(cap_budget, max(8, rows // 4))
    best = 8
    d = 8
    while d <= min(rows, cap):
        if rows % d == 0:
            best = d
        d += 8
    return best
    # TODO(synk): if even r_blk=8 overflows the budget (enormous H*W), also
    # tile the spatial axis.


def sigmoid_mul(x491, x487, *, donate_x487=False):
    """sigmoid(x491) * x487 for x491=(N,C,1,1), x487=(N,C,H,W).

    Pass bf16 arrays to halve HBM traffic; compute stays f32 in-kernel.
    Set donate_x487=True only if the caller donates x487's buffer.
    """
    n, c, h, w = x487.shape
    assert x491.shape == (n, c, 1, 1)

    rows = n * c
    spatial = h * w
    s = x491.reshape(rows, 1)                  # (R, 1) gate column
    x = x487.reshape(rows, spatial)            # (R, S) feature rows

    r_blk = _pick_row_block(rows, spatial, x487.dtype, x491.dtype)
    grid = (rows // r_blk,)

    aliases = {1: 0} if donate_x487 else {}    # x is input #1, single output #0

    out = pl.pallas_call(
        _se_gate_kernel,
        out_shape=jax.ShapeDtypeStruct((rows, spatial), x487.dtype),
        grid_spec=pl.GridSpec(
            grid=grid,
            in_specs=[
                pl.BlockSpec((r_blk, 1), lambda i: (i, 0)),        # tiny gate tile
                pl.BlockSpec((r_blk, spatial), lambda i: (i, 0)),  # big data tile
            ],
            out_specs=pl.BlockSpec((r_blk, spatial), lambda i: (i, 0)),
        ),
        compiler_params=pltpu.CompilerParams(
            # "parallel" is safe on every generation; steps are independent.
            dimension_semantics=("parallel",),
        ),
        input_output_aliases=aliases,
    )(s, x)

    return out.reshape(n, c, h, w)


if __name__ == "__main__":
    key = jax.random.PRNGKey(0)
    k1, k2 = jax.random.split(key)
    # Shapes from the module: x487=(1,1344,14,14), x491=(1,1344,1,1)
    x487 = jax.random.normal(k1, (1, 1344, 14, 14), dtype=jnp.float32)
    x491 = jax.random.normal(k2, (1, 1344, 1, 1), dtype=jnp.float32)

    # f32 path (matches the PyTorch module)
    out = jax.block_until_ready(sigmoid_mul(x491, x487))
    ref = jax.nn.sigmoid(x491) * x487
    assert out.shape == (1, 1344, 14, 14)
    assert jnp.allclose(out, ref, atol=1e-6, rtol=1e-6)

    # bf16 I/O path (halves HBM traffic; compute is still f32 in-kernel)
    out_bf16 = jax.block_until_ready(
        sigmoid_mul(x491.astype(jnp.bfloat16), x487.astype(jnp.bfloat16)))
    ref_bf16 = (jax.nn.sigmoid(x491) * x487).astype(jnp.bfloat16)
    assert out_bf16.dtype == jnp.bfloat16
    assert jnp.allclose(out_bf16.astype(jnp.float32),
                        ref_bf16.astype(jnp.float32), atol=2e-2, rtol=2e-2)

    print("KERNEL_OK")
</pallas_src>

<mosaic_0001>
module attributes {stable_mosaic.version = 11 : i64} {
  func.func @_se_gate_kernel(%arg0: i32, %arg1: memref<336x1xf32, #tpu.memory_space<vmem>>, %arg2: memref<336x196xf32, #tpu.memory_space<vmem>>, %arg3: memref<336x196xf32, #tpu.memory_space<vmem>>) attributes {dimension_semantics = [#tpu.dimension_semantics<parallel>], iteration_bounds = array<i64: 4>, scalar_prefetch = 0 : i64, scratch_operands = 0 : i64, tpu.core_type = #tpu.core_type<tc>, window_params = [{transform_indices = @transform_0, window_bounds = array<i64: 336, 1>}, {transform_indices = @transform_1, window_bounds = array<i64: 336, 196>}, {transform_indices = @transform_2, window_bounds = array<i64: 336, 196>}]} {
    %c0 = arith.constant 0 : index
    %c0_0 = arith.constant 0 : index
    %0 = vector.load %arg1[%c0, %c0_0] : memref<336x1xf32, #tpu.memory_space<vmem>>, vector<336x1xf32>
    %1 = arith.negf %0 : vector<336x1xf32>
    %2 = math.exp %1 : vector<336x1xf32>
    %cst = arith.constant 1.000000e+00 : f32
    %3 = vector.broadcast %cst : f32 to vector<336x1xf32>
    %4 = arith.addf %3, %2 : vector<336x1xf32>
    %5 = arith.divf %3, %4 : vector<336x1xf32>
    %c0_1 = arith.constant 0 : index
    %c0_2 = arith.constant 0 : index
    %6 = vector.load %arg2[%c0_1, %c0_2] : memref<336x196xf32, #tpu.memory_space<vmem>>, vector<336x196xf32>
    %7 = vector.broadcast %5 : vector<336x1xf32> to vector<336x196xf32>
    %8 = arith.mulf %7, %6 : vector<336x196xf32>
    %c0_3 = arith.constant 0 : index
    %c0_4 = arith.constant 0 : index
    %9 = vector.load %arg3[%c0_3, %c0_4] : memref<336x196xf32, #tpu.memory_space<vmem>>, vector<336x196xf32>
    tpu.vector_store %arg3[%c0_3, %c0_4], %8 {strides = array<i32>} : memref<336x196xf32, #tpu.memory_space<vmem>>, vector<336x196xf32>,
    return
  }
  func.func @transform_0(%arg0: i32) -> (i32, i32) {
    %c0_i32 = arith.constant 0 : i32
    %c0_i32_0 = arith.constant 0 : i32
    return %arg0, %c0_i32 : i32, i32
  }
  func.func @transform_1(%arg0: i32) -> (i32, i32) {
    %c0_i32 = arith.constant 0 : i32
    %c0_i32_0 = arith.constant 0 : i32
    return %arg0, %c0_i32 : i32, i32
  }
  func.func @transform_2(%arg0: i32) -> (i32, i32) {
    %c0_i32 = arith.constant 0 : i32
    %c0_i32_0 = arith.constant 0 : i32
    return %arg0, %c0_i32 : i32, i32
  }
}

</mosaic_0001>

<bundles_post_ra>
// kernel: tpu_custom_call.1
= control target key start
LH: loop header
LB: loop body
LE: loop exit
PB: predicated region body
PF: predicated region fallthrough
CT: control target
= control target key end

     0   :  { %s1260_s9 = smov 0   ;;  %s1542_s0 = inlined_call_operand.vmem [shape: f32[1344,1], index: 0, kind: input, shape index: {}]   ;;  %s1543_s1 = inlined_call_operand.vmem [shape: f32[1344,196], index: 1, kind: input, shape index: {}]   ;;  %s1544_s2 = inlined_call_operand.vmem [shape: f32[1344,196], index: 2, kind: output, shape index: {}]  }
   0x1 LB: > { %s1001_s10 = sadd.s32 4294967295, %s1242_s9   ;;  %p1005_p0 = scmp.ge.s32.totalorder %s1242_s9, 1  ;;  %s1242_s9 = sphi %s1260_s9, %s12_s9  }
   0x2   : > { %p125_p1 = scmp.lt.s32.totalorder %s1242_s9, 5 }
   0x4   : > { %p126_p2 = pnand %p1005_p0, %p125_p1 }
   0x5   : > { %s154_s11 = smul.u32 (!%p126_p2), 42, %s1001_s10  ;;  %v1244_v0 = vmov (!%p126_p2), 0   ;;  %vm847_vm0 = vcmask (!%p126_p2), 556032  }
   0x6   : > { %129 = sbr.rel (%p126_p2) target bundleno = 256 (0x100), region = 28  ;;  %1067 = vset.pattern.permute.xlu1 (!%p126_p2), %v1244_v0  ;;  %1066 = vset.pattern.permute.xlu0 (!%p126_p2), %v1244_v0 }
   0x7   : > { %p155_p3 = scmp.lt.s32.totalorder (!%p126_p2), %s154_s11, 167 }
   0xd   : > { %s1546_s11 = smov (!%p155_p3, %s154_s11), 167 }
   0xe   : > { %s1006_s12 = sshll.u32 %s1546_s11, 3  ;;  %s1055_s16 = sshll.u32 %s1546_s11, 4 }
   0xf   : > { %s1274_s15 = scalar_lea.vmem %s1542_s0, %s1006_s12  ;;  %s1322_s19 = scalar_lea.vmem %s1543_s1, %s1055_s16 }
  0x10   : > { %v176_v1 = vld [vmem:[%s1274_s15 + $0x10] sm:$0xff]  ;;  %v174_v2 = vld [vmem:[%s1274_s15] sm:$0xff]  ;;  %v177_v3 = vld [vmem:[%s1274_s15 + $0x18] sm:$0xff]  ;;  %s1331_s22 = scalar_lea.vmem %s1544_s2, %s1055_s16 }
  0x11   : > { %v1013_v4 = vmul.f32 -1.442695, %v176_v1  ;;  %v1011_v5 = vmul.f32 -1.442695, %v174_v2  ;;  %v1014_v6 = vmul.f32 -1.442695, %v177_v3 }
  0x12   : > { %v175_v7 = vld [vmem:[%s1274_s15 + $0x8] sm:$0xff]  ;;  %v178_v9 = vld [vmem:[%s1274_s15 + $0x20] sm:$0xff]  ;;  %v181_v13 = vld [vmem:[%s1274_s15 + $0x38] sm:$0xff] }
  0x13   : > { %v179_v8 = vld [vmem:[%s1274_s15 + $0x28] sm:$0xff]  ;;  %1068 = vpow2.f32 %v1013_v4  ;;  %v1012_v10 = vmul.f32 -1.442695, %v175_v7  ;;  %v1015_v12 = vmul.f32 -1.442695, %v178_v9  ;;  %v180_v14 = vld [vmem:[%s1274_s15 + $0x30] sm:$0xff] }
  0x14   : > { %v1016_v11 = vmul.f32 -1.442695, %v179_v8  ;;  %1070 = vpow2.f32 %v1011_v5  ;;  %v183_v15 = vld [vmem:[%s1274_s15 + $0x48] sm:$0xff]  ;;  %v1018_v16 = vmul.f32 -1.442695, %v181_v13  ;;  %v182_v18 = vld [vmem:[%s1274_s15 + $0x40] sm:$0xff] }
  0x15   : > { %1072 = vpow2.f32 %v1014_v6  ;;  %v1017_v17 = vmul.f32 -1.442695, %v180_v14  ;;  %v185_v19 = vld [vmem:[%s1274_s15 + $0x58] sm:$0xff]  ;;  %v1020_v20 = vmul.f32 -1.442695, %v183_v15  ;;  %v184_v21 = vld [vmem:[%s1274_s15 + $0x50] sm:$0xff] }
  0x16   : > { %1074 = vpow2.f32 %v1012_v10  ;;  %v1019_v22 = vmul.f32 -1.442695, %v182_v18  ;;  %v187_v23 = vld [vmem:[%s1274_s15 + $0x68] sm:$0xff]  ;;  %v1022_v24 = vmul.f32 -1.442695, %v185_v19  ;;  %v186_v46 = vld [vmem:[%s1274_s15 + $0x60] sm:$0xff] }
  0x17   : > { %1076 = vpow2.f32 %v1016_v11  ;;  %v1021_v25 = vmul.f32 -1.442695, %v184_v21  ;;  %v1024_v26 = vmul.f32 -1.442695, %v187_v23  ;;  %v189_v49 = vld [vmem:[%s1274_s15 + $0x78] sm:$0xff]  ;;  %v188_v52 = vld [vmem:[%s1274_s15 + $0x70] sm:$0xff] }
  0x18   : > { %1078 = vpow2.f32 %v1015_v12  ;;  %v1023_v55 = vmul.f32 -1.442695, %v186_v46  ;;  %v191_v56 = vld [vmem:[%s1274_s15 + $0x88] sm:$0xff]  ;;  %v1026_v59 = vmul.f32 -1.442695, %v189_v49  ;;  %v190_v60 = vld [vmem:[%s1274_s15 + $0x80] sm:$0xff] }
  0x19   : > { %1080 = vpow2.f32 %v1018_v16  ;;  %v1025_v62 = vmul.f32 -1.442695, %v188_v52  ;;  %v193_v63 = vld [vmem:[%s1274_s15 + $0x98] sm:$0xff]  ;;  %v1028_v1 = vmul.f32 -1.442695, %v191_v56  ;;  %v192_v2 = vld [vmem:[%s1274_s15 + $0x90] sm:$0xff] }
  0x1a   : > { %1082 = vpow2.f32 %v1017_v17  ;;  %v1027_v4 = vmul.f32 -1.442695, %v190_v60  ;;  %v195_v5 = vld [vmem:[%s1274_s15 + $0xa8] sm:$0xff]  ;;  %v1030_v7 = vmul.f32 -1.442695, %v193_v63  ;;  %v194_v8 = vld [vmem:[%s1274_s15 + $0xa0] sm:$0xff] }
  0x1b   : > { %1084 = vpow2.f32 %v1020_v20  ;;  %v1029_v10 = vmul.f32 -1.442695, %v192_v2  ;;  %v197_v11 = vld [vmem:[%s1274_s15 + $0xb8] sm:$0xff]  ;;  %v1032_v13 = vmul.f32 -1.442695, %v195_v5  ;;  %v196_v14 = vld [vmem:[%s1274_s15 + $0xb0] sm:$0xff] }
  0x1c   : > { %1086 = vpow2.f32 %v1019_v22  ;;  %v1031_v16 = vmul.f32 -1.442695, %v194_v8  ;;  %v199_v17 = vld [vmem:[%s1274_s15 + $0xc8] sm:$0xff]  ;;  %v1034_v19 = vmul.f32 -1.442695, %v197_v11  ;;  %v202_v56 = vld [vmem:[%s1274_s15 + $0xe0] sm:$0xff] }
  0x1d   : > { %v1069_v27 = vpop.eup %1068  ;;  %1088 = vpow2.f32 %v1022_v24  ;;  %v1033_v21 = vmul.f32 -1.442695, %v196_v14  ;;  %v1036_v23 = vmul.f32 -1.442695, %v199_v17  ;;  %v208_v14 = vld [vmem:[%s1274_s15 + $0x110] sm:$0xff]  ;;  %v211_v17 = vld [vmem:[%s1274_s15 + $0x128] sm:$0xff] }
  0x1e   : > { %v1071_v28 = vpop.eup %1070  ;;  %v344_v29 = vadd.f32 1.0, %v1069_v27  ;;  %1090 = vpow2.f32 %v1021_v25 }
  0x1f   : > { %v1073_v30 = vpop.eup %1072  ;;  %v342_v31 = vadd.f32 1.0, %v1071_v28  ;;  %1092 = vpow2.f32 %v1024_v26  ;;  %v198_v26 = vld [vmem:[%s1274_s15 + $0xc0] sm:$0xff] }
  0x20   : > { %v1075_v32 = vpop.eup %1074  ;;  %1094 = vrcp.f32 %v344_v29  ;;  %v345_v33 = vadd.f32 1.0, %v1073_v30 }
  0x21   : > { %v1077_v34 = vpop.eup %1076  ;;  %1096 = vrcp.f32 %v342_v31  ;;  %v343_v35 = vadd.f32 1.0, %v1075_v32  ;;  %v1035_v32 = vmul.f32 -1.442695, %v198_v26 }
  0x22   : > { %v1079_v36 = vpop.eup %1078  ;;  %1098 = vrcp.f32 %v345_v33  ;;  %v347_v37 = vadd.f32 1.0, %v1077_v34 }
  0x23   : > { %v1081_v38 = vpop.eup %1080  ;;  %1100 = vrcp.f32 %v343_v35  ;;  %v346_v39 = vadd.f32 1.0, %v1079_v36 }
  0x24   : > { %v1083_v40 = vpop.eup %1082  ;;  %1102 = vrcp.f32 %v347_v37  ;;  %v349_v41 = vadd.f32 1.0, %v1081_v38 }
  0x25   : > { %v1085_v42 = vpop.eup %1084  ;;  %1104 = vrcp.f32 %v346_v39  ;;  %v348_v43 = vadd.f32 1.0, %v1083_v40 }
  0x26   : > { %v1087_v44 = vpop.eup %1086  ;;  %1106 = vrcp.f32 %v349_v41  ;;  %v351_v45 = vadd.f32 1.0, %v1085_v42 }
  0x27   : > { %v1089_v47 = vpop.eup %1088  ;;  %1108 = vrcp.f32 %v348_v43  ;;  %v350_v48 = vadd.f32 1.0, %v1087_v44 }
  0x28   : > { %v1091_v50 = vpop.eup %1090  ;;  %1110 = vrcp.f32 %v351_v45  ;;  %v353_v51 = vadd.f32 1.0, %v1089_v47  ;;  %v201_v47 = vld [vmem:[%s1274_s15 + $0xd8] sm:$0xff] }
  0x29   : > { %v1093_v53 = vpop.eup %1092  ;;  %1112 = vrcp.f32 %v350_v48  ;;  %v352_v54 = vadd.f32 1.0, %v1091_v50  ;;  %v200_v50 = vld [vmem:[%s1274_s15 + $0xd0] sm:$0xff] }
  0x2a   : > { %v1095_v57 = vpop.eup %1094  ;;  %1114 = vrcp.f32 %v353_v51  ;;  %v355_v58 = vadd.f32 1.0, %v1093_v53  ;;  %v203_v53 = vld [vmem:[%s1274_s15 + $0xe8] sm:$0xff] }
  0x2b   : > { %v1097_v61 = vpop.eup %1096  ;;  %564 = vperm.xlu1 %1067, %v1095_v57   ;;  %1116 = vrcp.f32 %v352_v54 }
  0x2c   : > { %v1099_v0 = vpop.eup %1098  ;;  %554 = vperm.xlu0 %1066, %v1097_v61   ;;  %1118 = vrcp.f32 %v355_v58  ;;  %v1037_v58 = vmul.f32 -1.442695, %v200_v50  ;;  %v1040_v61 = vmul.f32 -1.442695, %v203_v53  ;;  %v214_v50 = vld [vmem:[%s1274_s15 + $0x140] sm:$0xff] }
  0x2d   : > { %v1101_v3 = vpop.eup %1100  ;;  %1120 = vpow2.f32 %v1023_v55  ;;  %v1038_v55 = vmul.f32 -1.442695, %v201_v47  ;;  %v215_v47 = vld [vmem:[%s1274_s15 + $0x148] sm:$0xff] }
  0x2e   : > { %v1103_v6 = vpop.eup %1102  ;;  %1122 = vpow2.f32 %v1026_v59  ;;  %v205_v59 = vld [vmem:[%s1274_s15 + $0xf8] sm:$0xff] }
  0x2f   : > { %v1105_v9 = vpop.eup %1104  ;;  %569 = vperm.xlu1 %1067, %v1099_v0   ;;  %1124 = vpow2.f32 %v1025_v62  ;;  %v204_v62 = vld [vmem:[%s1274_s15 + $0xf0] sm:$0xff]  ;;  %v1039_v0 = vmul.f32 -1.442695, %v202_v56  ;;  %v1051_v56 = vmul.f32 -1.442695, %v214_v50  ;;  %v483_v50 = vld [vmem:[%s1322_s19 + $0x78] sm:$0xff] }
  0x30   : > { %v1107_v12 = vpop.eup %1106  ;;  %559 = vperm.xlu0 %1066, %v1101_v3   ;;  %1126 = vpow2.f32 %v1028_v1  ;;  %v207_v1 = vld [vmem:[%s1274_s15 + $0x108] sm:$0xff]  ;;  %v1042_v3 = vmul.f32 -1.442695, %v205_v59 }
  0x31   : > { %v1109_v15 = vpop.eup %1108  ;;  %1128 = vpow2.f32 %v1027_v4  ;;  %v206_v4 = vld [vmem:[%s1274_s15 + $0x100] sm:$0xff] }
  0x32   : > { %v1111_v18 = vpop.eup %1110  ;;  %1130 = vpow2.f32 %v1030_v7  ;;  %v209_v7 = vld [vmem:[%s1274_s15 + $0x118] sm:$0xff]  ;;  %v1043_v11 = vmul.f32 -1.442695, %v206_v4 }
  0x33   : > { %v1113_v20 = vpop.eup %1112  ;;  %579 = vperm.xlu1 %1067, %v1103_v6   ;;  %1132 = vpow2.f32 %v1029_v10  ;;  %v1041_v6 = vmul.f32 -1.442695, %v204_v62 }
  0x34   : > { %v1115_v22 = vpop.eup %1114  ;;  %574 = vperm.xlu0 %1066, %v1105_v9   ;;  %1134 = vpow2.f32 %v1032_v13  ;;  %v1044_v9 = vmul.f32 -1.442695, %v207_v1  ;;  %v1046_v13 = vmul.f32 -1.442695, %v209_v7 }
  0x35   : > { %v1117_v24 = vpop.eup %1116  ;;  %1136 = vpow2.f32 %v1031_v16 }
  0x36   : > { %v1119_v25 = vpop.eup %1118  ;;  %1138 = vpow2.f32 %v1034_v19 }
  0x37   : > { %v1121_v27 = vpop.eup %1120  ;;  %589 = vperm.xlu1 %1067, %v1107_v12   ;;  %1140 = vpow2.f32 %v1033_v21 }
  0x38   : > { %v1123_v28 = vpop.eup %1122  ;;  %584 = vperm.xlu0 %1066, %v1109_v15   ;;  %v354_v29 = vadd.f32 1.0, %v1121_v27  ;;  %1142 = vpow2.f32 %v1036_v23 }
  0x39   : > { %v1125_v30 = vpop.eup %1124  ;;  %v357_v31 = vadd.f32 1.0, %v1123_v28  ;;  %v213_v28 = vld [vmem:[%s1274_s15 + $0x138] sm:$0xff] }
  0x3a   : > { %v1127_v33 = vpop.eup %1126  ;;  %1144 = vrcp.f32 %v354_v29  ;;  %v356_v34 = vadd.f32 1.0, %v1125_v30 }
  0x3b   : > { %v1129_v35 = vpop.eup %1128  ;;  %599 = vperm.xlu1 %1067, %v1111_v18   ;;  %1146 = vrcp.f32 %v357_v31  ;;  %v359_v36 = vadd.f32 1.0, %v1127_v33 }
  0x3c   : > { %v1131_v37 = vpop.eup %1130  ;;  %594 = vperm.xlu0 %1066, %v1113_v20   ;;  %1148 = vrcp.f32 %v356_v34  ;;  %v358_v38 = vadd.f32 1.0, %v1129_v35  ;;  %v1045_v20 = vmul.f32 -1.442695, %v208_v14 }
  0x3d   : > { %v1133_v39 = vpop.eup %1132  ;;  %v361_v40 = vadd.f32 1.0, %v1131_v37  ;;  %1150 = vpow2.f32 %v1035_v32 }
  0x3e   : > { %v1135_v41 = vpop.eup %1134  ;;  %1152 = vrcp.f32 %v359_v36  ;;  %v360_v42 = vadd.f32 1.0, %v1133_v39  ;;  %v1050_v36 = vmul.f32 -1.442695, %v213_v28 }
  0x3f   : > { %v1137_v43 = vpop.eup %1136  ;;  %609 = vperm.xlu1 %1067, %v1115_v22   ;;  %1154 = vrcp.f32 %v358_v38  ;;  %v363_v44 = vadd.f32 1.0, %v1135_v41  ;;  %v1048_v22 = vmul.f32 -1.442695, %v211_v17 }
  0x40   : > { %v1139_v45 = vpop.eup %1138  ;;  %604 = vperm.xlu0 %1066, %v1117_v24   ;;  %1156 = vrcp.f32 %v361_v40  ;;  %v362_v46 = vadd.f32 1.0, %v1137_v43  ;;  %v210_v24 = vld [vmem:[%s1274_s15 + $0x120] sm:$0xff] }
  0x41   : > { %v1141_v48 = vpop.eup %1140  ;;  %1158 = vrcp.f32 %v360_v42  ;;  %v365_v49 = vadd.f32 1.0, %v1139_v45  ;;  %v1047_v31 = vmul.f32 -1.442695, %v210_v24  ;;  %v212_v45 = vld [vmem:[%s1274_s15 + $0x130] sm:$0xff] }
  0x42   : > { %v1143_v51 = vpop.eup %1142  ;;  %1160 = vrcp.f32 %v363_v44  ;;  %v364_v52 = vadd.f32 1.0, %v1141_v48 }
  0x43   : > { %619 = vperm.xlu1 %1067, %v1119_v25   ;;  %1162 = vrcp.f32 %v362_v46  ;;  %v367_v54 = vadd.f32 1.0, %v1143_v51 }
  0x44   : > { %v1145_v57 = vpop.eup %1144  ;;  %1164 = vrcp.f32 %v365_v49 }
  0x45   : > { %v1147_v60 = vpop.eup %1146  ;;  %614 = vperm.xlu0 %1066, %v1145_v57   ;;  %1166 = vrcp.f32 %v364_v52  ;;  %v1049_v52 = vmul.f32 -1.442695, %v212_v45 }
  0x46   : > { %v1149_v63 = vpop.eup %1148  ;;  %1168 = vrcp.f32 %v367_v54  ;;  %v1052_v54 = vmul.f32 -1.442695, %v215_v47 }
  0x47   : > { %v1151_v2 = vpop.eup %1150  ;;  %629 = vperm.xlu1 %1067, %v1147_v60   ;;  %1170 = vpow2.f32 %v1038_v55 }
  0x48   : > { %v1153_v5 = vpop.eup %1152  ;;  %1172 = vpow2.f32 %v1037_v58  ;;  %v366_v16 = vadd.f32 1.0, %v1151_v2 }
  0x49   : > { %v1155_v8 = vpop.eup %1154  ;;  %624 = vperm.xlu0 %1066, %v1149_v63   ;;  %1174 = vpow2.f32 %v1040_v61 }
  0x4a   : > { %v1157_v10 = vpop.eup %1156  ;;  %1176 = vpow2.f32 %v1039_v0 }
  0x4b   : > { %v1159_v12 = vpop.eup %1158  ;;  %639 = vperm.xlu1 %1067, %v1153_v5   ;;  %1178 = vpow2.f32 %v1042_v3 }
  0x4c   : > { %v1161_v15 = vpop.eup %1160  ;;  %1180 = vpow2.f32 %v1041_v6 }
  0x4d   : > { %v1163_v18 = vpop.eup %1162  ;;  %634 = vperm.xlu0 %1066, %v1155_v8   ;;  %1182 = vpow2.f32 %v1044_v9 }
  0x4e   : > { %v1165_v19 = vpop.eup %1164  ;;  %1184 = vpow2.f32 %v1043_v11 }
  0x4f   : > { %v1167_v21 = vpop.eup %1166  ;;  %649 = vperm.xlu1 %1067, %v1157_v10   ;;  %1186 = vpow2.f32 %v1046_v13 }
  0x50   : > { %v1169_v23 = vpop.eup %1168  ;;  %1188 = vrcp.f32 %v366_v16 }
  0x51   : > { %v1171_v25 = vpop.eup %1170  ;;  %644 = vperm.xlu0 %1066, %v1159_v12   ;;  %1190 = vpow2.f32 %v1045_v20  ;;  %v473_v20 = vld [vmem:[%s1322_s19 + $0x28] sm:$0xff] }
  0x52   : > { %v1173_v26 = vpop.eup %1172  ;;  %v369_v27 = vadd.f32 1.0, %v1171_v25  ;;  %1192 = vpow2.f32 %v1048_v22  ;;  %v469_v22 = vld [vmem:[%s1322_s19 + $0x8] sm:$0xff] }
  0x53   : > { %v1175_v29 = vpop.eup %1174  ;;  %659 = vperm.xlu1 %1067, %v1161_v15   ;;  %v368_v30 = vadd.f32 1.0, %v1173_v26 }
  0x54   : > { %v1177_v32 = vpop.eup %1176  ;;  %1194 = vrcp.f32 %v369_v27  ;;  %v371_v33 = vadd.f32 1.0, %v1175_v29  ;;  %v474_v29 = vld [vmem:[%s1322_s19 + $0x30] sm:$0xff] }
  0x55   : > { %v1179_v34 = vpop.eup %1178  ;;  %654 = vperm.xlu0 %1066, %v1163_v18   ;;  %1196 = vrcp.f32 %v368_v30  ;;  %v370_v35 = vadd.f32 1.0, %v1177_v32  ;;  %v475_v30 = vld [vmem:[%s1322_s19 + $0x38] sm:$0xff] }
  0x56   : > { %v1181_v37 = vpop.eup %1180  ;;  %1198 = vrcp.f32 %v371_v33  ;;  %v373_v38 = vadd.f32 1.0, %v1179_v34  ;;  %v471_v32 = vld [vmem:[%s1322_s19 + $0x18] sm:$0xff] }
  0x57   : > { %v1183_v39 = vpop.eup %1182  ;;  %669 = vperm.xlu1 %1067, %v1165_v19   ;;  %1200 = vpow2.f32 %v1047_v31  ;;  %v372_v41 = vadd.f32 1.0, %v1181_v37  ;;  %v472_v19 = vld [vmem:[%s1322_s19 + $0x20] sm:$0xff]  ;;  %v470_v31 = vld [vmem:[%s1322_s19 + $0x10] sm:$0xff] }
  0x58   : > { %v1185_v40 = vpop.eup %1184  ;;  %1202 = vrcp.f32 %v370_v35  ;;  %v375_v44 = vadd.f32 1.0, %v1183_v39  ;;  %v478_v39 = vld [vmem:[%s1322_s19 + $0x50] sm:$0xff] }
  0x59   : > { %v1187_v42 = vpop.eup %1186  ;;  %664 = vperm.xlu0 %1066, %v1167_v21   ;;  %1204 = vpow2.f32 %v1050_v36  ;;  %v374_v46 = vadd.f32 1.0, %v1185_v40  ;;  %v468_v21 = vld [vmem:[%s1322_s19] sm:$0xff]  ;;  %v479_v40 = vld [vmem:[%s1322_s19 + $0x58] sm:$0xff] }
  0x5a   : > { %v1189_v43 = vpop.eup %1188  ;;  %1206 = vrcp.f32 %v373_v38  ;;  %v377_v49 = vadd.f32 1.0, %v1187_v42  ;;  %v477_v42 = vld [vmem:[%s1322_s19 + $0x48] sm:$0xff] }
  0x5b   : > { %679 = vperm.xlu1 %1067, %v1169_v23   ;;  %v1191_v48 = vpop.eup %1190  ;;  %1208 = vrcp.f32 %v372_v41  ;;  %v476_v41 = vld [vmem:[%s1322_s19 + $0x40] sm:$0xff] }
  0x5c   : > { %v1193_v51 = vpop.eup %1192  ;;  %1210 = vrcp.f32 %v375_v44  ;;  %v376_v58 = vadd.f32 1.0, %v1191_v48 }
  0x5d   : > { %674 = vperm.xlu0 %1066, %v1189_v43   ;;  %1212 = vrcp.f32 %v374_v46  ;;  %v379_v61 = vadd.f32 1.0, %v1193_v51  ;;  %v480_v51 = vld [vmem:[%s1322_s19 + $0x60] sm:$0xff] }
  0x5e   : > { %v1195_v53 = vpop.eup %1194  ;;  %1214 = vrcp.f32 %v377_v49  ;;  %v482_v49 = vld [vmem:[%s1322_s19 + $0x70] sm:$0xff] }
  0x5f   : > { %v1197_v55 = vpop.eup %1196  ;;  %689 = vperm.xlu1 %1067, %v1195_v53   ;;  %1216 = vpow2.f32 %v1049_v52  ;;  %v481_v52 = vld [vmem:[%s1322_s19 + $0x68] sm:$0xff] }
  0x60   : > { %v1199_v57 = vpop.eup %1198  ;;  %1218 = vpow2.f32 %v1052_v54 }
  0x61   : > { %v1201_v59 = vpop.eup %1200  ;;  %684 = vperm.xlu0 %1066, %v1197_v55   ;;  %1220 = vpow2.f32 %v1051_v56 }
  0x62   : > { %v1203_v60 = vpop.eup %1202  ;;  %1222 = vrcp.f32 %v376_v58  ;;  %v378_v0 = vadd.f32 1.0, %v1201_v59  ;;  %v486_v59 = vld [vmem:[%s1322_s19 + $0x90] sm:$0xff] }
  0x63   : > { %v1205_v62 = vpop.eup %1204  ;;  %699 = vperm.xlu1 %1067, %v1199_v57   ;;  %1224 = vrcp.f32 %v379_v61  ;;  %v484_v61 = vld [vmem:[%s1322_s19 + $0x80] sm:$0xff] }
  0x64   : > { %v1207_v63 = vpop.eup %1206  ;;  %v381_v2 = vadd.f32 1.0, %v1205_v62  ;;  %1226 = vrcp.f32 %v378_v0  ;;  %v485_v62 = vld [vmem:[%s1322_s19 + $0x88] sm:$0xff] }
  0x65   : > { %694 = vperm.xlu0 %1066, %v1203_v60   ;;  %v1209_v1 = vpop.eup %1208  ;;  %v487_v60 = vld [vmem:[%s1322_s19 + $0x98] sm:$0xff] }
  0x66   : > { %v1211_v3 = vpop.eup %1210  ;;  %1228 = vrcp.f32 %v381_v2 }
  0x67   : > { %709 = vperm.xlu1 %1067, %v1207_v63   ;;  %v1213_v4 = vpop.eup %1212 }
  0x68   : > { %v1215_v5 = vpop.eup %1214 }
  0x69   : > { %704 = vperm.xlu0 %1066, %v1209_v1   ;;  %v1217_v6 = vpop.eup %1216 }
  0x6a   : > { %v1219_v7 = vpop.eup %1218  ;;  %v380_v8 = vadd.f32 1.0, %v1217_v6  ;;  %v491_v6 = vld [vmem:[%s1322_s19 + $0xb8] sm:$0xff] }
  0x6b   : > { %719 = vperm.xlu1 %1067, %v1211_v3   ;;  %v1221_v9 = vpop.eup %1220  ;;  %v383_v10 = vadd.f32 1.0, %v1219_v7  ;;  %v488_v7 = vld [vmem:[%s1322_s19 + $0xa0] sm:$0xff] }
  0x6c   : > { %v1223_v11 = vpop.eup %1222  ;;  %1230 = vrcp.f32 %v380_v8  ;;  %v382_v12 = vadd.f32 1.0, %v1221_v9  ;;  %v489_v8 = vld [vmem:[%s1322_s19 + $0xa8] sm:$0xff] }
  0x6d   : > { %714 = vperm.xlu0 %1066, %v1213_v4   ;;  %1232 = vrcp.f32 %v383_v10  ;;  %v1225_v13 = vpop.eup %1224 }
  0x6e   : > { %1234 = vrcp.f32 %v382_v12  ;;  %v1227_v14 = vpop.eup %1226 }
  0x6f   : > { %729 = vperm.xlu1 %1067, %v1215_v5   ;;  %v490_v5 = vld [vmem:[%s1322_s19 + $0xb0] sm:$0xff] }
  0x70   : > { %v1229_v15 = vpop.eup %1228 }
  0x71   : > { %724 = vperm.xlu0 %1066, %v1223_v11  }
  0x73   : > { %739 = vperm.xlu1 %1067, %v1225_v13  }
  0x75   : > { %734 = vperm.xlu0 %1066, %v1227_v14  }
  0x76   : > { %v1231_v16 = vpop.eup %1230 }
  0x77   : > { %749 = vperm.xlu1 %1067, %v1229_v15   ;;  %v1233_v17 = vpop.eup %1232  ;;  %v494_v15 = vld [vmem:[%s1322_s19 + $0xd0] sm:$0xff] }
  0x78   : > { %v1235_v18 = vpop.eup %1234 }
  0x79   : > { %744 = vperm.xlu0 %1066, %v1231_v16   ;;  %v495_v16 = vld [vmem:[%s1322_s19 + $0xd8] sm:$0xff] }
  0x7b   : > { %759 = vperm.xlu1 %1067, %v1233_v17  }
  0x7d   : > { %754 = vperm.xlu0 %1066, %v1235_v18   ;;  %v492_v18 = vld [vmem:[%s1322_s19 + $0xc0] sm:$0xff] }
  0xaa   : > { %v565_v23 = vpop.permute.xlu1 %564 }
  0xab   : > { %v766_v24 = vmul.f32 %v565_v23, %v472_v19  ;;  %v767_v25 = vmul.f32 %v565_v23, %v473_v20  ;;  %v555_v26 = vpop.permute.xlu0 %554  ;;  %v493_v19 = vld [vmem:[%s1322_s19 + $0xc8] sm:$0xff]  ;;  %v498_v23 = vld [vmem:[%s1322_s19 + $0xf0] sm:$0xff] }
  0xac   : > { %v762_v27 = vmul.f32 %v555_v26, %v468_v21  ;;  %v763_v28 = vmul.f32 %v555_v26, %v469_v22 }
  0xad   : > { %851 = vst [vmem:[%s1331_s22 + $0x20] sm:$0xff] %v766_v24  ;;  %852 = vst.msk [vmem:[%s1331_s22 + $0x28] sm:$0xff] %vm847_vm0, %v767_v25  ;;  %v499_v24 = vld [vmem:[%s1322_s19 + $0xf8] sm:$0xff] }
  0xae   : > { %846 = vst [vmem:[%s1331_s22] sm:$0xff] %v762_v27  ;;  %848 = vst.msk [vmem:[%s1331_s22 + $0x8] sm:$0xff] %vm847_vm0, %v763_v28  ;;  %v570_v33 = vpop.permute.xlu1 %569  ;;  %v496_v28 = vld [vmem:[%s1322_s19 + $0xe0] sm:$0xff] }
  0xaf   : > { %v768_v34 = vmul.f32 %v570_v33, %v474_v29  ;;  %v769_v35 = vmul.f32 %v570_v33, %v475_v30  ;;  %v560_v36 = vpop.permute.xlu0 %559  ;;  %v497_v29 = vld [vmem:[%s1322_s19 + $0xe8] sm:$0xff]  ;;  %v502_v33 = vld [vmem:[%s1322_s19 + $0x110] sm:$0xff] }
  0xb0   : > { %v764_v37 = vmul.f32 %v560_v36, %v470_v31  ;;  %v765_v38 = vmul.f32 %v560_v36, %v471_v32 }
  0xb1   : > { %853 = vst [vmem:[%s1331_s22 + $0x30] sm:$0xff] %v768_v34  ;;  %854 = vst.msk [vmem:[%s1331_s22 + $0x38] sm:$0xff] %vm847_vm0, %v769_v35  ;;  %v503_v34 = vld [vmem:[%s1322_s19 + $0x118] sm:$0xff] }
  0xb2   : > { %849 = vst [vmem:[%s1331_s22 + $0x10] sm:$0xff] %v764_v37  ;;  %850 = vst.msk [vmem:[%s1331_s22 + $0x18] sm:$0xff] %vm847_vm0, %v765_v38  ;;  %v580_v43 = vpop.permute.xlu1 %579  ;;  %v500_v38 = vld [vmem:[%s1322_s19 + $0x100] sm:$0xff] }
  0xb3   : > { %v772_v44 = vmul.f32 %v580_v43, %v478_v39  ;;  %v773_v45 = vmul.f32 %v580_v43, %v479_v40  ;;  %v575_v46 = vpop.permute.xlu0 %574  ;;  %v501_v39 = vld [vmem:[%s1322_s19 + $0x108] sm:$0xff]  ;;  %v506_v43 = vld [vmem:[%s1322_s19 + $0x130] sm:$0xff] }
  0xb4   : > { %v770_v47 = vmul.f32 %v575_v46, %v476_v41  ;;  %v771_v48 = vmul.f32 %v575_v46, %v477_v42 }
  0xb5   : > { %857 = vst [vmem:[%s1331_s22 + $0x50] sm:$0xff] %v772_v44  ;;  %858 = vst.msk [vmem:[%s1331_s22 + $0x58] sm:$0xff] %vm847_vm0, %v773_v45  ;;  %v507_v44 = vld [vmem:[%s1322_s19 + $0x138] sm:$0xff] }
  0xb6   : > { %855 = vst [vmem:[%s1331_s22 + $0x40] sm:$0xff] %v770_v47  ;;  %856 = vst.msk [vmem:[%s1331_s22 + $0x48] sm:$0xff] %vm847_vm0, %v771_v48  ;;  %v590_v53 = vpop.permute.xlu1 %589  ;;  %v504_v48 = vld [vmem:[%s1322_s19 + $0x120] sm:$0xff] }
  0xb7   : > { %v776_v54 = vmul.f32 %v590_v53, %v482_v49  ;;  %v777_v55 = vmul.f32 %v590_v53, %v483_v50  ;;  %v585_v56 = vpop.permute.xlu0 %584  ;;  %v505_v49 = vld [vmem:[%s1322_s19 + $0x128] sm:$0xff]  ;;  %v510_v53 = vld [vmem:[%s1322_s19 + $0x150] sm:$0xff] }
  0xb8   : > { %v774_v57 = vmul.f32 %v585_v56, %v480_v51  ;;  %v775_v58 = vmul.f32 %v585_v56, %v481_v52 }
  0xb9   : > { %861 = vst [vmem:[%s1331_s22 + $0x70] sm:$0xff] %v776_v54  ;;  %862 = vst.msk [vmem:[%s1331_s22 + $0x78] sm:$0xff] %vm847_vm0, %v777_v55  ;;  %v511_v54 = vld [vmem:[%s1322_s19 + $0x158] sm:$0xff] }
  0xba   : > { %859 = vst [vmem:[%s1331_s22 + $0x60] sm:$0xff] %v774_v57  ;;  %860 = vst.msk [vmem:[%s1331_s22 + $0x68] sm:$0xff] %vm847_vm0, %v775_v58  ;;  %v600_v63 = vpop.permute.xlu1 %599  ;;  %v508_v58 = vld [vmem:[%s1322_s19 + $0x140] sm:$0xff] }
  0xbb   : > { %v780_v0 = vmul.f32 %v600_v63, %v486_v59  ;;  %v781_v1 = vmul.f32 %v600_v63, %v487_v60  ;;  %v595_v2 = vpop.permute.xlu0 %594  ;;  %v509_v59 = vld [vmem:[%s1322_s19 + $0x148] sm:$0xff]  ;;  %v514_v63 = vld [vmem:[%s1322_s19 + $0x170] sm:$0xff] }
  0xbc   : > { %v778_v3 = vmul.f32 %v595_v2, %v484_v61  ;;  %v779_v4 = vmul.f32 %v595_v2, %v485_v62 }
  0xbd   : > { %865 = vst [vmem:[%s1331_s22 + $0x90] sm:$0xff] %v780_v0  ;;  %866 = vst.msk [vmem:[%s1331_s22 + $0x98] sm:$0xff] %vm847_vm0, %v781_v1  ;;  %v515_v0 = vld [vmem:[%s1322_s19 + $0x178] sm:$0xff] }
  0xbe   : > { %863 = vst [vmem:[%s1331_s22 + $0x80] sm:$0xff] %v778_v3  ;;  %864 = vst.msk [vmem:[%s1331_s22 + $0x88] sm:$0xff] %vm847_vm0, %v779_v4  ;;  %v610_v9 = vpop.permute.xlu1 %609  ;;  %v512_v4 = vld [vmem:[%s1322_s19 + $0x160] sm:$0xff] }
  0xbf   : > { %v784_v10 = vmul.f32 %v610_v9, %v490_v5  ;;  %v785_v11 = vmul.f32 %v610_v9, %v491_v6  ;;  %v605_v12 = vpop.permute.xlu0 %604  ;;  %v513_v5 = vld [vmem:[%s1322_s19 + $0x168] sm:$0xff]  ;;  %v518_v9 = vld [vmem:[%s1322_s19 + $0x190] sm:$0xff] }
  0xc0   : > { %v782_v13 = vmul.f32 %v605_v12, %v488_v7  ;;  %v783_v14 = vmul.f32 %v605_v12, %v489_v8 }
  0xc1   : > { %869 = vst [vmem:[%s1331_s22 + $0xb0] sm:$0xff] %v784_v10  ;;  %870 = vst.msk [vmem:[%s1331_s22 + $0xb8] sm:$0xff] %vm847_vm0, %v785_v11  ;;  %v519_v10 = vld [vmem:[%s1322_s19 + $0x198] sm:$0xff] }
  0xc2   : > { %867 = vst [vmem:[%s1331_s22 + $0xa0] sm:$0xff] %v782_v13  ;;  %868 = vst.msk [vmem:[%s1331_s22 + $0xa8] sm:$0xff] %vm847_vm0, %v783_v14  ;;  %v620_v17 = vpop.permute.xlu1 %619  ;;  %v516_v14 = vld [vmem:[%s1322_s19 + $0x180] sm:$0xff] }
  0xc3   : > { %v788_v20 = vmul.f32 %v620_v17, %v494_v15  ;;  %v789_v21 = vmul.f32 %v620_v17, %v495_v16  ;;  %v517_v15 = vld [vmem:[%s1322_s19 + $0x188] sm:$0xff] }
  0xc4   : > { %v615_v22 = vpop.permute.xlu0 %614 }
  0xc5   : > { %873 = vst [vmem:[%s1331_s22 + $0xd0] sm:$0xff] %v788_v20  ;;  %874 = vst.msk [vmem:[%s1331_s22 + $0xd8] sm:$0xff] %vm847_vm0, %v789_v21  ;;  %v786_v25 = vmul.f32 %v615_v22, %v492_v18  ;;  %v787_v26 = vmul.f32 %v615_v22, %v493_v19  ;;  %v522_v19 = vld [vmem:[%s1322_s19 + $0x1b0] sm:$0xff]  ;;  %v523_v20 = vld [vmem:[%s1322_s19 + $0x1b8] sm:$0xff] }
  0xc6   : > { %v630_v27 = vpop.permute.xlu1 %629 }
  0xc7   : > { %871 = vst [vmem:[%s1331_s22 + $0xc0] sm:$0xff] %v786_v25  ;;  %872 = vst.msk [vmem:[%s1331_s22 + $0xc8] sm:$0xff] %vm847_vm0, %v787_v26  ;;  %v792_v30 = vmul.f32 %v630_v27, %v498_v23  ;;  %v793_v31 = vmul.f32 %v630_v27, %v499_v24  ;;  %v520_v24 = vld [vmem:[%s1322_s19 + $0x1a0] sm:$0xff]  ;;  %v521_v25 = vld [vmem:[%s1322_s19 + $0x1a8] sm:$0xff] }
  0xc8   : > { %v625_v32 = vpop.permute.xlu0 %624 }
  0xc9   : > { %877 = vst [vmem:[%s1331_s22 + $0xf0] sm:$0xff] %v792_v30  ;;  %878 = vst.msk [vmem:[%s1331_s22 + $0xf8] sm:$0xff] %vm847_vm0, %v793_v31  ;;  %v790_v35 = vmul.f32 %v625_v32, %v496_v28  ;;  %v791_v36 = vmul.f32 %v625_v32, %v497_v29  ;;  %v526_v29 = vld [vmem:[%s1322_s19 + $0x1d0] sm:$0xff]  ;;  %v527_v30 = vld [vmem:[%s1322_s19 + $0x1d8] sm:$0xff] }
  0xca   : > { %v640_v37 = vpop.permute.xlu1 %639 }
  0xcb   : > { %875 = vst [vmem:[%s1331_s22 + $0xe0] sm:$0xff] %v790_v35  ;;  %876 = vst.msk [vmem:[%s1331_s22 + $0xe8] sm:$0xff] %vm847_vm0, %v791_v36  ;;  %v796_v40 = vmul.f32 %v640_v37, %v502_v33  ;;  %v797_v41 = vmul.f32 %v640_v37, %v503_v34  ;;  %v524_v34 = vld [vmem:[%s1322_s19 + $0x1c0] sm:$0xff]  ;;  %v525_v35 = vld [vmem:[%s1322_s19 + $0x1c8] sm:$0xff] }
  0xcc   : > { %v635_v42 = vpop.permute.xlu0 %634 }
  0xcd   : > { %881 = vst [vmem:[%s1331_s22 + $0x110] sm:$0xff] %v796_v40  ;;  %882 = vst.msk [vmem:[%s1331_s22 + $0x118] sm:$0xff] %vm847_vm0, %v797_v41  ;;  %v794_v45 = vmul.f32 %v635_v42, %v500_v38  ;;  %v795_v46 = vmul.f32 %v635_v42, %v501_v39  ;;  %v530_v39 = vld [vmem:[%s1322_s19 + $0x1f0] sm:$0xff]  ;;  %v531_v40 = vld [vmem:[%s1322_s19 + $0x1f8] sm:$0xff] }
  0xce   : > { %v650_v47 = vpop.permute.xlu1 %649 }
  0xcf   : > { %879 = vst [vmem:[%s1331_s22 + $0x100] sm:$0xff] %v794_v45  ;;  %880 = vst.msk [vmem:[%s1331_s22 + $0x108] sm:$0xff] %vm847_vm0, %v795_v46  ;;  %v800_v50 = vmul.f32 %v650_v47, %v506_v43  ;;  %v801_v51 = vmul.f32 %v650_v47, %v507_v44  ;;  %v528_v44 = vld [vmem:[%s1322_s19 + $0x1e0] sm:$0xff]  ;;  %v529_v45 = vld [vmem:[%s1322_s19 + $0x1e8] sm:$0xff] }
  0xd0   : > { %v645_v52 = vpop.permute.xlu0 %644 }
  0xd1   : > { %885 = vst [vmem:[%s1331_s22 + $0x130] sm:$0xff] %v800_v50  ;;  %886 = vst.msk [vmem:[%s1331_s22 + $0x138] sm:$0xff] %vm847_vm0, %v801_v51  ;;  %v798_v55 = vmul.f32 %v645_v52, %v504_v48  ;;  %v799_v56 = vmul.f32 %v645_v52, %v505_v49  ;;  %v534_v49 = vld [vmem:[%s1322_s19 + $0x210] sm:$0xff]  ;;  %v535_v50 = vld [vmem:[%s1322_s19 + $0x218] sm:$0xff] }
  0xd2   : > { %v660_v57 = vpop.permute.xlu1 %659 }
  0xd3   : > { %883 = vst [vmem:[%s1331_s22 + $0x120] sm:$0xff] %v798_v55  ;;  %884 = vst.msk [vmem:[%s1331_s22 + $0x128] sm:$0xff] %vm847_vm0, %v799_v56  ;;  %v804_v60 = vmul.f32 %v660_v57, %v510_v53  ;;  %v805_v61 = vmul.f32 %v660_v57, %v511_v54  ;;  %v532_v54 = vld [vmem:[%s1322_s19 + $0x200] sm:$0xff]  ;;  %v533_v55 = vld [vmem:[%s1322_s19 + $0x208] sm:$0xff] }
  0xd4   : > { %v655_v62 = vpop.permute.xlu0 %654 }
  0xd5   : > { %889 = vst [vmem:[%s1331_s22 + $0x150] sm:$0xff] %v804_v60  ;;  %890 = vst.msk [vmem:[%s1331_s22 + $0x158] sm:$0xff] %vm847_vm0, %v805_v61  ;;  %v802_v1 = vmul.f32 %v655_v62, %v508_v58  ;;  %v803_v2 = vmul.f32 %v655_v62, %v509_v59  ;;  %v538_v59 = vld [vmem:[%s1322_s19 + $0x230] sm:$0xff]  ;;  %v539_v60 = vld [vmem:[%s1322_s19 + $0x238] sm:$0xff] }
  0xd6   : > { %v670_v3 = vpop.permute.xlu1 %669 }
  0xd7   : > { %887 = vst [vmem:[%s1331_s22 + $0x140] sm:$0xff] %v802_v1  ;;  %888 = vst.msk [vmem:[%s1331_s22 + $0x148] sm:$0xff] %vm847_vm0, %v803_v2  ;;  %v808_v6 = vmul.f32 %v670_v3, %v514_v63  ;;  %v809_v7 = vmul.f32 %v670_v3, %v515_v0  ;;  %v536_v0 = vld [vmem:[%s1322_s19 + $0x220] sm:$0xff]  ;;  %v537_v1 = vld [vmem:[%s1322_s19 + $0x228] sm:$0xff] }
  0xd8   : > { %v665_v8 = vpop.permute.xlu0 %664 }
  0xd9   : > { %893 = vst [vmem:[%s1331_s22 + $0x170] sm:$0xff] %v808_v6  ;;  %894 = vst.msk [vmem:[%s1331_s22 + $0x178] sm:$0xff] %vm847_vm0, %v809_v7  ;;  %v806_v11 = vmul.f32 %v665_v8, %v512_v4  ;;  %v807_v12 = vmul.f32 %v665_v8, %v513_v5  ;;  %v542_v5 = vld [vmem:[%s1322_s19 + $0x250] sm:$0xff]  ;;  %v543_v6 = vld [vmem:[%s1322_s19 + $0x258] sm:$0xff] }
  0xda   : > { %v680_v13 = vpop.permute.xlu1 %679 }
  0xdb   : > { %891 = vst [vmem:[%s1331_s22 + $0x160] sm:$0xff] %v806_v11  ;;  %892 = vst.msk [vmem:[%s1331_s22 + $0x168] sm:$0xff] %vm847_vm0, %v807_v12  ;;  %v812_v16 = vmul.f32 %v680_v13, %v518_v9  ;;  %v813_v17 = vmul.f32 %v680_v13, %v519_v10  ;;  %v540_v10 = vld [vmem:[%s1322_s19 + $0x240] sm:$0xff]  ;;  %v541_v11 = vld [vmem:[%s1322_s19 + $0x248] sm:$0xff] }
  0xdc   : > { %v675_v18 = vpop.permute.xlu0 %674 }
  0xdd   : > { %897 = vst [vmem:[%s1331_s22 + $0x190] sm:$0xff] %v812_v16  ;;  %898 = vst.msk [vmem:[%s1331_s22 + $0x198] sm:$0xff] %vm847_vm0, %v813_v17  ;;  %v810_v21 = vmul.f32 %v675_v18, %v516_v14  ;;  %v811_v22 = vmul.f32 %v675_v18, %v517_v15  ;;  %v546_v15 = vld [vmem:[%s1322_s19 + $0x270] sm:$0xff]  ;;  %v547_v16 = vld [vmem:[%s1322_s19 + $0x278] sm:$0xff] }
  0xde   : > { %v690_v23 = vpop.permute.xlu1 %689 }
  0xdf   : > { %895 = vst [vmem:[%s1331_s22 + $0x180] sm:$0xff] %v810_v21  ;;  %896 = vst.msk [vmem:[%s1331_s22 + $0x188] sm:$0xff] %vm847_vm0, %v811_v22  ;;  %v816_v26 = vmul.f32 %v690_v23, %v522_v19  ;;  %v817_v27 = vmul.f32 %v690_v23, %v523_v20  ;;  %v544_v20 = vld [vmem:[%s1322_s19 + $0x260] sm:$0xff]  ;;  %v545_v21 = vld [vmem:[%s1322_s19 + $0x268] sm:$0xff] }
  0xe0   : > { %v685_v28 = vpop.permute.xlu0 %684 }
  0xe1   : > { %901 = vst [vmem:[%s1331_s22 + $0x1b0] sm:$0xff] %v816_v26  ;;  %902 = vst.msk [vmem:[%s1331_s22 + $0x1b8] sm:$0xff] %vm847_vm0, %v817_v27  ;;  %v814_v31 = vmul.f32 %v685_v28, %v520_v24  ;;  %v815_v32 = vmul.f32 %v685_v28, %v521_v25  ;;  %v550_v25 = vld [vmem:[%s1322_s19 + $0x290] sm:$0xff]  ;;  %v551_v26 = vld [vmem:[%s1322_s19 + $0x298] sm:$0xff] }
  0xe2   : > { %v700_v33 = vpop.permute.xlu1 %699 }
  0xe3   : > { %899 = vst [vmem:[%s1331_s22 + $0x1a0] sm:$0xff] %v814_v31  ;;  %900 = vst.msk [vmem:[%s1331_s22 + $0x1a8] sm:$0xff] %vm847_vm0, %v815_v32  ;;  %v820_v36 = vmul.f32 %v700_v33, %v526_v29  ;;  %v821_v37 = vmul.f32 %v700_v33, %v527_v30  ;;  %v548_v30 = vld [vmem:[%s1322_s19 + $0x280] sm:$0xff]  ;;  %v549_v31 = vld [vmem:[%s1322_s19 + $0x288] sm:$0xff] }
  0xe4   : > { %v695_v38 = vpop.permute.xlu0 %694 }
  0xe5   : > { %905 = vst [vmem:[%s1331_s22 + $0x1d0] sm:$0xff] %v820_v36  ;;  %906 = vst.msk [vmem:[%s1331_s22 + $0x1d8] sm:$0xff] %vm847_vm0, %v821_v37  ;;  %v818_v41 = vmul.f32 %v695_v38, %v524_v34  ;;  %v819_v42 = vmul.f32 %v695_v38, %v525_v35 }
  0xe6   : > { %v710_v43 = vpop.permute.xlu1 %709 }
  0xe7   : > { %903 = vst [vmem:[%s1331_s22 + $0x1c0] sm:$0xff] %v818_v41  ;;  %904 = vst.msk [vmem:[%s1331_s22 + $0x1c8] sm:$0xff] %vm847_vm0, %v819_v42  ;;  %v824_v46 = vmul.f32 %v710_v43, %v530_v39  ;;  %v825_v47 = vmul.f32 %v710_v43, %v531_v40 }
  0xe8   : > { %v705_v48 = vpop.permute.xlu0 %704 }
  0xe9   : > { %909 = vst [vmem:[%s1331_s22 + $0x1f0] sm:$0xff] %v824_v46  ;;  %910 = vst.msk [vmem:[%s1331_s22 + $0x1f8] sm:$0xff] %vm847_vm0, %v825_v47  ;;  %v822_v51 = vmul.f32 %v705_v48, %v528_v44  ;;  %v823_v52 = vmul.f32 %v705_v48, %v529_v45 }
  0xea   : > { %v720_v53 = vpop.permute.xlu1 %719 }
  0xeb   : > { %907 = vst [vmem:[%s1331_s22 + $0x1e0] sm:$0xff] %v822_v51  ;;  %908 = vst.msk [vmem:[%s1331_s22 + $0x1e8] sm:$0xff] %vm847_vm0, %v823_v52  ;;  %v828_v56 = vmul.f32 %v720_v53, %v534_v49  ;;  %v829_v57 = vmul.f32 %v720_v53, %v535_v50 }
  0xec   : > { %v715_v58 = vpop.permute.xlu0 %714 }
  0xed   : > { %913 = vst [vmem:[%s1331_s22 + $0x210] sm:$0xff] %v828_v56  ;;  %914 = vst.msk [vmem:[%s1331_s22 + $0x218] sm:$0xff] %vm847_vm0, %v829_v57  ;;  %v826_v61 = vmul.f32 %v715_v58, %v532_v54  ;;  %v827_v62 = vmul.f32 %v715_v58, %v533_v55 }
  0xee   : > { %v730_v63 = vpop.permute.xlu1 %729 }
  0xef   : > { %911 = vst [vmem:[%s1331_s22 + $0x200] sm:$0xff] %v826_v61  ;;  %912 = vst.msk [vmem:[%s1331_s22 + $0x208] sm:$0xff] %vm847_vm0, %v827_v62  ;;  %v832_v2 = vmul.f32 %v730_v63, %v538_v59  ;;  %v833_v3 = vmul.f32 %v730_v63, %v539_v60 }
  0xf0   : > { %v725_v4 = vpop.permute.xlu0 %724 }
  0xf1   : > { %917 = vst [vmem:[%s1331_s22 + $0x230] sm:$0xff] %v832_v2  ;;  %918 = vst.msk [vmem:[%s1331_s22 + $0x238] sm:$0xff] %vm847_vm0, %v833_v3  ;;  %v830_v7 = vmul.f32 %v725_v4, %v536_v0  ;;  %v831_v8 = vmul.f32 %v725_v4, %v537_v1 }
  0xf2   : > { %v740_v9 = vpop.permute.xlu1 %739 }
  0xf3   : > { %915 = vst [vmem:[%s1331_s22 + $0x220] sm:$0xff] %v830_v7  ;;  %916 = vst.msk [vmem:[%s1331_s22 + $0x228] sm:$0xff] %vm847_vm0, %v831_v8  ;;  %v836_v12 = vmul.f32 %v740_v9, %v542_v5  ;;  %v837_v13 = vmul.f32 %v740_v9, %v543_v6 }
  0xf4   : > { %v735_v14 = vpop.permute.xlu0 %734 }
  0xf5   : > { %921 = vst [vmem:[%s1331_s22 + $0x250] sm:$0xff] %v836_v12  ;;  %922 = vst.msk [vmem:[%s1331_s22 + $0x258] sm:$0xff] %vm847_vm0, %v837_v13  ;;  %v834_v17 = vmul.f32 %v735_v14, %v540_v10  ;;  %v835_v18 = vmul.f32 %v735_v14, %v541_v11 }
  0xf6   : > { %v750_v19 = vpop.permute.xlu1 %749 }
  0xf7   : > { %919 = vst [vmem:[%s1331_s22 + $0x240] sm:$0xff] %v834_v17  ;;  %920 = vst.msk [vmem:[%s1331_s22 + $0x248] sm:$0xff] %vm847_vm0, %v835_v18  ;;  %v840_v22 = vmul.f32 %v750_v19, %v546_v15  ;;  %v841_v23 = vmul.f32 %v750_v19, %v547_v16 }
  0xf8   : > { %v745_v24 = vpop.permute.xlu0 %744 }
  0xf9   : > { %925 = vst [vmem:[%s1331_s22 + $0x270] sm:$0xff] %v840_v22  ;;  %926 = vst.msk [vmem:[%s1331_s22 + $0x278] sm:$0xff] %vm847_vm0, %v841_v23  ;;  %v838_v27 = vmul.f32 %v745_v24, %v544_v20  ;;  %v839_v28 = vmul.f32 %v745_v24, %v545_v21 }
  0xfa   : > { %v760_v29 = vpop.permute.xlu1 %759 }
  0xfb   : > { %923 = vst [vmem:[%s1331_s22 + $0x260] sm:$0xff] %v838_v27  ;;  %924 = vst.msk [vmem:[%s1331_s22 + $0x268] sm:$0xff] %vm847_vm0, %v839_v28  ;;  %v844_v32 = vmul.f32 %v760_v29, %v550_v25  ;;  %v845_v33 = vmul.f32 %v760_v29, %v551_v26 }
  0xfc   : > { %v755_v34 = vpop.permute.xlu0 %754 }
  0xfd   : > { %929 = vst [vmem:[%s1331_s22 + $0x290] sm:$0xff] %v844_v32  ;;  %930 = vst.msk [vmem:[%s1331_s22 + $0x298] sm:$0xff] %vm847_vm0, %v845_v33  ;;  %v842_v35 = vmul.f32 %v755_v34, %v548_v30  ;;  %v843_v36 = vmul.f32 %v755_v34, %v549_v31 }
  0xff   : > { %927 = vst [vmem:[%s1331_s22 + $0x280] sm:$0xff] %v842_v35  ;;  %928 = vst.msk [vmem:[%s1331_s22 + $0x288] sm:$0xff] %vm847_vm0, %v843_v36 }
 0x100 PF: > { %s12_s9 = sadd.s32 1, %s1242_s9  }
 0x101   : > { %p9_p4 = scmp.ge.s32.totalorder %s12_s9, 6  }
 0x103   :  { %11 = sbr.rel (!%p9_p4) target bundleno = 1 (0x1), region = 61 }

</bundles_post_ra>
